<compile_context>
chip_gen: v7x
topology: tpu7x:2x2x1
jax: 0.10.0
libtpu: 0.0.40
codegen_flags: <defaults>
</compile_context>

<pallas_src>
import functools

import numpy as np
import jax
import jax.numpy as jnp
from jax import lax
from jax.experimental import pallas as pl
from jax.experimental.pallas import tpu as pltpu

LOG_2PI = float(np.log(2.0 * np.pi))

_TILE_BYTES = 8 * 1024 * 1024     # target z tile size (double-buffered -> 16 MiB)
_VMEM_LIMIT = 40 * 1024 * 1024    # raised scoped-VMEM limit; fits every generation


def _round_up(x, m):
    return ((x + m - 1) // m) * m


def _sumsq_kernel(z_ref, out_ref, acc_ref, *,
                  tiles_per_core, n_tiles, tr, rows_last):
    """Grid = (cores, row-tiles per core).  Each core reduces its row tiles.

    z_ref:   (tr, TC)    current tile of the flattened z slab
    out_ref: (8, 128)    this core's partial-sum block (lane-dense, full store)
    acc_ref: (slab, TC)  lane-dense running sum of z^2 for this core
    """
    c = pl.program_id(0)
    t = pl.program_id(1)
    g = c * tiles_per_core + t            # global tile index (may overrun on split)

    slab = acc_ref.shape[0]               # sublane multiple for z's dtype (8 for f32)
    tc = acc_ref.shape[1]

    @pl.when(t == 0)
    def _():
        acc_ref[...] = jnp.zeros_like(acc_ref)

    def fold(n_rows):
        # Accumulate sum over n_rows (static, multiple of `slab`) of z^2.
        # 4 independent accumulation chains; slabs loaded straight from z_ref
        # (no whole-tile z^2 temporary), cross-lane reduce deferred to finalize.
        group = 4 * slab
        n_groups = n_rows // group
        zero = jnp.zeros((slab, tc), jnp.float32)

        def body(j, carry):
            p0, p1, p2, p3 = carry
            base = pl.multiple_of(j * group, group)
            s0 = z_ref[pl.ds(base, slab), :].astype(jnp.float32)
            s1 = z_ref[pl.ds(base + slab, slab), :].astype(jnp.float32)
            s2 = z_ref[pl.ds(base + 2 * slab, slab), :].astype(jnp.float32)
            s3 = z_ref[pl.ds(base + 3 * slab, slab), :].astype(jnp.float32)
            return (p0 + s0 * s0, p1 + s1 * s1, p2 + s2 * s2, p3 + s3 * s3)

        p0, p1, p2, p3 = zero, zero, zero, zero
        if n_groups > 0:
            p0, p1, p2, p3 = lax.fori_loop(0, n_groups, body,
                                           (p0, p1, p2, p3), unroll=2)
        for k in range(n_groups * group, n_rows, slab):   # static leftovers (<=3)
            s = z_ref[k:k + slab, :].astype(jnp.float32)
            p0 = p0 + s * s
        acc_ref[...] += (p0 + p1) + (p2 + p3)

    if rows_last == tr:
        @pl.when(g < n_tiles)                 # skip clamped overrun tiles
        def _():
            fold(tr)
    else:
        @pl.when(g < n_tiles - 1)
        def _():
            fold(tr)

        @pl.when(g == n_tiles - 1)            # statically shorter ragged tile
        def _():
            fold(rows_last)

    @pl.when(t == tiles_per_core - 1)
    def _():
        # Single cross-lane reduce per core; lane-dense full-block store.
        out_ref[...] = jnp.full(out_ref.shape, jnp.sum(acc_ref[...]), jnp.float32)


def nll_loss(z, sldj, k=512):
    """Pallas equivalent of NLLLoss(k).forward(z, sldj). Returns a scalar."""
    B = z.shape[0]
    D = int(np.prod(z.shape[1:]))
    N = B * D

    itemsize = jnp.dtype(z.dtype).itemsize
    sub = max(8, 32 // itemsize)          # sublane multiple for this dtype

    z_flat = z.reshape(-1)                # contiguous flatten: no copy

    # Pick a lane width that avoids any wrapper-side pad (and its HBM copy).
    tc = None
    for cand in (512, 256, 128):
        if N % (sub * cand) == 0:
            tc = cand
            break
    if tc is None:
        # Rare ragged case: pad only to a multiple of (sub * 512) elements.
        # Padded zeros are exactly neutral because +log(2*pi) is folded into
        # the compile-time constant below.
        tc = 512
        n_pad = _round_up(N, sub * tc)
        z_flat = jnp.pad(z_flat, (0, n_pad - N))
    else:
        n_pad = N

    rows = n_pad // tc                    # multiple of `sub`
    tr_cap = max(sub, (_TILE_BYTES // (tc * itemsize)) // sub * sub)
    tr = min(tr_cap, rows)
    n_tiles = -(-rows // tr)
    rows_last = rows - (n_tiles - 1) * tr

    n_cores = 2 if n_tiles >= 2 else 1    # megacore split (serial no-op on 1-TC chips)
    tiles_per_core = -(-n_tiles // n_cores)

    z2d = z_flat.reshape(rows, tc)

    kernel = functools.partial(
        _sumsq_kernel, tiles_per_core=tiles_per_core, n_tiles=n_tiles,
        tr=tr, rows_last=rows_last)

    partials = pl.pallas_call(
        kernel,
        out_shape=jax.ShapeDtypeStruct((8 * n_cores, 128), jnp.float32),
        grid_spec=pltpu.PrefetchScalarGridSpec(
            num_scalar_prefetch=0,
            grid=(n_cores, tiles_per_core),
            in_specs=[pl.BlockSpec(
                (tr, tc),
                # Clamp overrun tiles of the last core to a valid block; the
                # kernel skips their fold, so the re-read is harmless.
                lambda c, t: (jnp.minimum(c * tiles_per_core + t, n_tiles - 1), 0))],
            out_specs=pl.BlockSpec((8, 128), lambda c, t: (c, 0)),
            scratch_shapes=[pltpu.VMEM((sub, tc), jnp.float32)],
        ),
        compiler_params=pltpu.CompilerParams(
            dimension_semantics=("parallel", "arbitrary"),
            vmem_limit_bytes=_VMEM_LIMIT,
        ),
    )(z2d)

    # Tiny epilogue in the wrapper: 2-way core sum + sldj + constants + mean.
    total_z2 = jnp.sum(partials[0::8, 0])
    sldj_sum = jnp.sum(sldj.astype(jnp.float32))
    batch_const = float(B) * (0.5 * D * LOG_2PI + float(np.log(k)) * D)
    ll_sum = -0.5 * total_z2 - batch_const + sldj_sum
    return -(ll_sum / float(B))


def _nll_reference(z, sldj, k=512):
    """Pure-JAX reference mirroring the PyTorch module."""
    B = z.shape[0]
    D = int(np.prod(z.shape[1:]))
    prior_ll = -0.5 * (z.astype(jnp.float32) ** 2 + LOG_2PI)
    prior_ll = prior_ll.reshape(B, -1).sum(-1) - np.log(k) * D
    ll = prior_ll + sldj.astype(jnp.float32)
    return -ll.mean()


if __name__ == "__main__":
    key = jax.random.PRNGKey(0)
    kz, ks = jax.random.split(key)

    B, C, H, W = 2, 4, 16, 16
    z = jax.random.normal(kz, (B, C, H, W), dtype=jnp.float32)
    sldj = jax.random.normal(ks, (B,), dtype=jnp.float32)

    nll = jax.block_until_ready(nll_loss(z, sldj, k=512))
    ref = jax.block_until_ready(_nll_reference(z, sldj, k=512))

    assert jnp.allclose(nll, ref, rtol=1e-5, atol=1e-4), (nll, ref)
    print("KERNEL_OK")
</pallas_src>

<mosaic_0001>
module attributes {stable_mosaic.version = 11 : i64} {
  func.func @_sumsq_kernel(%arg0: i32, %arg1: i32, %arg2: memref<8x256xf32, #tpu.memory_space<vmem>>, %arg3: memref<8x128xf32, #tpu.memory_space<vmem>>, %arg4: memref<8x256xf32, #tpu.memory_space<vmem>>) attributes {dimension_semantics = [#tpu.dimension_semantics<parallel>, #tpu.dimension_semantics<arbitrary>], iteration_bounds = array<i64: 1, 1>, scalar_prefetch = 0 : i64, scratch_operands = 1 : i64, tpu.core_type = #tpu.core_type<tc>, window_params = [{transform_indices = @transform_0, window_bounds = array<i64: 8, 256>}, {transform_indices = @transform_1, window_bounds = array<i64: 8, 128>}]} {
    %c1_i32 = arith.constant 1 : i32
    %0 = arith.muli %arg0, %c1_i32 : i32
    %1 = arith.addi %0, %arg1 : i32
    %c0_i32 = arith.constant 0 : i32
    %2 = arith.cmpi eq, %arg1, %c0_i32 : i32
    %3 = arith.extui %2 : i1 to i32
    %c0_i32_0 = arith.constant 0 : i32
    %4 = arith.cmpi ne, %3, %c0_i32_0 : i32
    scf.if %4 {
      %cst = arith.constant 0.000000e+00 : f32
      %11 = vector.broadcast %cst : f32 to vector<8x256xf32>
      %c0 = arith.constant 0 : index
      %c0_5 = arith.constant 0 : index
      %12 = vector.load %arg4[%c0, %c0_5] : memref<8x256xf32, #tpu.memory_space<vmem>>, vector<8x256xf32>
      tpu.vector_store %arg4[%c0, %c0_5], %11 {strides = array<i32>} : memref<8x256xf32, #tpu.memory_space<vmem>>, vector<8x256xf32>,
    } else {
    }
    %c1_i32_1 = arith.constant 1 : i32
    %5 = arith.cmpi slt, %1, %c1_i32_1 : i32
    %6 = arith.extui %5 : i1 to i32
    %c0_i32_2 = arith.constant 0 : i32
    %7 = arith.cmpi ne, %6, %c0_i32_2 : i32
    scf.if %7 {
      %cst = arith.constant 0.000000e+00 : f32
      %11 = vector.broadcast %cst : f32 to vector<8x256xf32>
      %c0 = arith.constant 0 : index
      %c0_5 = arith.constant 0 : index
      %12 = vector.load %arg2[%c0, %c0_5] : memref<8x256xf32, #tpu.memory_space<vmem>>, vector<8x256xf32>
      %13 = arith.mulf %12, %12 : vector<8x256xf32>
      %14 = arith.addf %11, %13 : vector<8x256xf32>
      %c0_6 = arith.constant 0 : index
      %c0_7 = arith.constant 0 : index
      %15 = vector.load %arg4[%c0_6, %c0_7] : memref<8x256xf32, #tpu.memory_space<vmem>>, vector<8x256xf32>
      %16 = arith.addf %14, %11 : vector<8x256xf32>
      %17 = arith.addf %11, %11 : vector<8x256xf32>
      %18 = arith.addf %16, %17 : vector<8x256xf32>
      %19 = arith.addf %15, %18 : vector<8x256xf32>
      %c0_8 = arith.constant 0 : index
      %c0_9 = arith.constant 0 : index
      %20 = vector.load %arg4[%c0_8, %c0_9] : memref<8x256xf32, #tpu.memory_space<vmem>>, vector<8x256xf32>
      tpu.vector_store %arg4[%c0_8, %c0_9], %19 {strides = array<i32>} : memref<8x256xf32, #tpu.memory_space<vmem>>, vector<8x256xf32>,
    } else {
    }
    %c0_i32_3 = arith.constant 0 : i32
    %8 = arith.cmpi eq, %arg1, %c0_i32_3 : i32
    %9 = arith.extui %8 : i1 to i32
    %c0_i32_4 = arith.constant 0 : i32
    %10 = arith.cmpi ne, %9, %c0_i32_4 : i32
    scf.if %10 {
      %c0 = arith.constant 0 : index
      %c0_5 = arith.constant 0 : index
      %11 = vector.load %arg4[%c0, %c0_5] : memref<8x256xf32, #tpu.memory_space<vmem>>, vector<8x256xf32>
      %12 = vector.shape_cast %11 : vector<8x256xf32> to vector<1x8x256xf32>
      %cst = arith.constant dense<0.000000e+00> : vector<1xf32>
      %13 = vector.multi_reduction <add>, %12, %cst [1, 2] : vector<1x8x256xf32> to vector<1xf32>
      %14 = vector.shape_cast %13 : vector<1xf32> to vector<1x1x1xf32>
      %15 = vector.extract %14[0, 0, 0] : f32 from vector<1x1x1xf32>
      %16 = vector.broadcast %15 : f32 to vector<8x128xf32>
      %c0_6 = arith.constant 0 : index
      %c0_7 = arith.constant 0 : index
      %17 = vector.load %arg3[%c0_6, %c0_7] : memref<8x128xf32, #tpu.memory_space<vmem>>, vector<8x128xf32>
      tpu.vector_store %arg3[%c0_6, %c0_7], %16 {strides = array<i32>} : memref<8x128xf32, #tpu.memory_space<vmem>>, vector<8x128xf32>,
    } else {
    }
    return
  }
  func.func @transform_0(%arg0: i32, %arg1: i32) -> (i32, i32) {
    %c1_i32 = arith.constant 1 : i32
    %0 = arith.muli %arg0, %c1_i32 : i32
    %1 = arith.addi %0, %arg1 : i32
    %c0_i32 = arith.constant 0 : i32
    %2 = arith.minsi %1, %c0_i32 : i32
    %c0_i32_0 = arith.constant 0 : i32
    %c0_i32_1 = arith.constant 0 : i32
    return %2, %c0_i32_0 : i32, i32
  }
  func.func @transform_1(%arg0: i32, %arg1: i32) -> (i32, i32) {
    %c0_i32 = arith.constant 0 : i32
    %c0_i32_0 = arith.constant 0 : i32
    return %arg0, %c0_i32 : i32, i32
  }
}

</mosaic_0001>

<bundles_post_ra>
// kernel: tpu_custom_call.1
= control target key start
LH: loop header
LB: loop body
LE: loop exit
PB: predicated region body
PF: predicated region fallthrough
CT: control target
= control target key end

     0   :  { %6 = vsyncpa [#allocation4], 0  ;;  %s179_s0 = inlined_call_operand.hbm [shape: f32[8,256], index: 0, kind: input, shape index: {}]   ;;  %s180_s1 = inlined_call_operand.hbm [shape: f32[8,128], index: 1, kind: output, shape index: {}]  }
   0x1   :  { %7 = vsyncpa [#allocation5], 0  ;;  %s143_s6 = smov [#allocation3]   ;;  %s95_s10 = scalar_lea.hbm %s179_s0, 256 }
   0x2   :  { %s20_s7 = sshll.u32 %s143_s6, 4  ;;  %p96_p0 = scmp.ne.s32.totalorder %s179_s0, %s95_s10  ;;  %s21_s7 = int_to_ptr.vmem [resolvable:$true] %s20_s7 }
   0x3   :  { %p99_p1 = scmp.lt.u32.totalorder %s95_s10, %s179_s0 }
   0x5   :  { %p101_p2 = pnand %p99_p1, %p96_p0 }
   0x7   :  { %104 = shalt.err (!%p101_p2)
}
   0x8   :  { %s105_s15 = scalar_lea.vmem %s21_s7, 256  ;;  %p110_p4 = scmp.lt.s32.totalorder %s21_s7, %s21_s7 }
   0x9   :  { %p106_p3 = scmp.ne.s32.totalorder %s21_s7, %s105_s15  ;;  %p111_p5 = scmp.lt.s32.totalorder %s105_s15, %s105_s15 }
   0xb   :  { %p112_p6 = por %p111_p5, %p110_p4 }
   0xd   :  { %p113_p7 = pnand %p112_p6, %p106_p3 }
   0xf   :  { %116 = shalt.err (!%p113_p7)
}
  0x10   :  { %23 = dma.hbm_to_vmem [thread:$0]  %s179_s0, 256, %s21_s7, [#allocation4]  }
  0x11   :  { %139 = dma.done.wait [#allocation4], 256  }
  0x12   :  { %140 = vsyncadd [#allocation4], 4294967040  ;;  %v41_v0 = vld [vmem:[#allocation3] sm:$0xff]  ;;  %v42_v1 = vld [vmem:[#allocation3 + $0x8] sm:$0xff]  ;;  %s144_s18 = smov [#allocation6]  }
  0x13   :  { %v43_v2 = vmul.f32 %v41_v0, %v41_v0  ;;  %v44_v3 = vmul.f32 %v42_v1, %v42_v1  ;;  %s80_s19 = sshll.u32 %s144_s18, 4  ;;  %s81_s19 = int_to_ptr.vmem [resolvable:$true] %s80_s19 }
  0x14   :  { %s117_s0 = scalar_lea.vmem %s81_s19, 128  ;;  %p122_p9 = scmp.lt.s32.totalorder %s81_s19, %s81_s19 }
  0x15   :  { %v62_v4 = vadd.f32 %v44_v3, %v43_v2  ;;  %p118_p8 = scmp.ne.s32.totalorder %s81_s19, %s117_s0  ;;  %p123_p10 = scmp.lt.s32.totalorder %s117_s0, %s117_s0 }
  0x17   :  { %63 = vadd.xlane.f32.xlu0 %v62_v4  ;;  %p124_p11 = por %p123_p10, %p122_p9 }
  0x19   :  { %p125_p12 = pnand %p124_p11, %p118_p8 }
  0xa4   :  { %v64_v5 = vpop.xlane.xlu0 %63 }
  0xa5   :  { %v65_v6 = vrot.slane %v64_v5, 4 }
  0xa7   :  { %v66_v7 = vadd.f32 %v65_v6, %v64_v5 }
  0xa9   :  { %v67_v8 = vrot.slane %v66_v7, 2 }
  0xab   :  { %v68_v9 = vadd.f32 %v67_v8, %v66_v7 }
  0xad   :  { %v69_v10 = vrot.slane %v68_v9, 1 }
  0xaf   :  { %v70_v11 = vadd.f32 %v69_v10, %v68_v9 }
  0xb1   :  { %91 = vpush %v70_v11 }
  0xe2   :  { %s92_s20 = spop %91 }
  0xe3   :  { %v72_v12 = vstv %s92_s20 }
  0xe4   :  { %73 = vst [vmem:[#allocation6] sm:$0xff] %v72_v12 }
  0xe5   :  { %128 = shalt.err (!%p125_p12)
}
  0xe6   :  { %s129_s23 = scalar_lea.hbm %s180_s1, 128 }
  0xe7   :  { %p130_p13 = scmp.ne.s32.totalorder %s180_s1, %s129_s23  ;;  %p133_p0 = scmp.lt.u32.totalorder %s129_s23, %s180_s1 }
  0xe9   :  { %p135_p1 = pnand %p133_p0, %p130_p13 }
  0xeb   :  { %138 = shalt.err (!%p135_p1)
}
  0xec   :  { %83 = dma.vmem_to_hbm [thread:$0]  %s81_s19, 128, %s180_s1, [#allocation5]  }
  0xed   :  { %141 = dma.done.wait [#allocation5], 128  }
  0xee   :  { %142 = vsyncadd [#allocation5], 4294967168 }
  0xef   :  { %87 = vsyncpa [#allocation4], 1 }
  0xf0   :  { %88 = vsyncpa [#allocation5], 1 }

</bundles_post_ra>
